<compile_context>
chip_gen: v5e
topology: v5e:2x2
jax: 0.10.0
libtpu: 0.0.40
codegen_flags: <defaults>
</compile_context>

<pallas_src>
import jax
import jax.numpy as jnp
from jax.experimental import pallas as pl
from jax.experimental.pallas import tpu as pltpu

_NEG_INF = -1e30      # finite "-inf": padded logit lanes contribute exp()==0 to LSE
_HID_PAD = 128        # fc3 output padded 64 -> 128 (lane-dense, exact zeros)
_OUT_PAD = 128        # logits padded 10 -> 128 (lane-dense store)
_IN_DIM = 784


def _mlp_kernel(x_ref, w1_ref, b1_ref, w2_ref, b2_ref,
                w3_ref, b3_ref, w4_ref, b4_ref, o_ref):
    # Input tile arrives as f32; cast to bf16 in-kernel (saves an HBM round trip
    # that a wrapper-side convert would cost).
    x = x_ref[...].astype(jnp.bfloat16)
    # Layer 1: (TM,784)bf16 @ (784,256)bf16 -> f32 acc; bias + ReLU in f32.
    h = jnp.dot(x, w1_ref[...], preferred_element_type=jnp.float32)
    h = jnp.maximum(h + b1_ref[...], 0.0).astype(jnp.bfloat16)
    # Layer 2: (TM,256) @ (256,128)
    h = jnp.dot(h, w2_ref[...], preferred_element_type=jnp.float32)
    h = jnp.maximum(h + b2_ref[...], 0.0).astype(jnp.bfloat16)
    # Layer 3: (TM,128) @ (128,128)  (cols 64..127 are zero-padded -> h3 pad = 0)
    h = jnp.dot(h, w3_ref[...], preferred_element_type=jnp.float32)
    h = jnp.maximum(h + b3_ref[...], 0.0).astype(jnp.bfloat16)
    # Layer 4: (TM,128) @ (128,128)  (rows 64..127 zero; cols 10..127 padding,
    # bias there = -1e30 so they vanish in the LSE)
    logits = jnp.dot(h, w4_ref[...], preferred_element_type=jnp.float32)
    logits = logits + b4_ref[...]
    # Numerically stable log_softmax over dim=1.
    m = jnp.max(logits, axis=-1, keepdims=True)
    shifted = logits - m
    lse = jnp.log(jnp.sum(jnp.exp(shifted), axis=-1, keepdims=True))
    o_ref[...] = (shifted - lse).astype(o_ref.dtype)


def _prepare_params(params):
    """Weights -> bf16 (in,out layout); biases stay f32.

    fc3: zero-pad out dim 64->128 (exact).  fc4: zero-pad in dim 64->128 and
    out dim 10->128; padded output-bias lanes get -1e30.
    """
    w1, b1, w2, b2, w3, b3, w4, b4 = params
    bf16 = jnp.bfloat16

    w3p = jnp.zeros((w3.shape[0], _HID_PAD), jnp.float32).at[:, :w3.shape[1]].set(w3)
    b3p = jnp.zeros((1, _HID_PAD), jnp.float32).at[:, :b3.shape[1]].set(b3)
    w4p = jnp.zeros((_HID_PAD, _OUT_PAD), jnp.float32)
    w4p = w4p.at[:w4.shape[0], :w4.shape[1]].set(w4)
    b4p = jnp.full((1, _OUT_PAD), _NEG_INF, jnp.float32).at[:, :b4.shape[1]].set(b4)

    return (w1.astype(bf16), b1.astype(jnp.float32),
            w2.astype(bf16), b2.astype(jnp.float32),
            w3p.astype(bf16), b3p,
            w4p.astype(bf16), b4p)


def classifier_forward(x, params, *, tm_max=2048):
    """x: (B, 1, 28, 28) float32 (NCHW).  Returns (B, 10) f32 log-probs."""
    B = x.shape[0]
    x_flat = x.reshape(B, -1)                     # == torch view(x.shape[0], -1)
    D = x_flat.shape[1]
    w1, b1, w2, b2, w3, b3, w4, b4 = _prepare_params(params)

    # Tiny pad to a sublane multiple only (rarely triggered; NOT a pad to tm).
    B_pad = ((B + 7) // 8) * 8
    if B_pad != B:
        x_flat = jnp.pad(x_flat, ((0, B_pad - B), (0, 0)))

    # Batch tile: multiple of 8, capped at tm_max, and sized so there are >=2
    # grid tiles whenever possible (keeps both v7x TensorCores busy).  The
    # final grid tile may be partial; Pallas masks it and the wrapper slices.
    half = ((pl.cdiv(B_pad, 2) + 7) // 8) * 8
    tm = min(tm_max, max(8, half))
    n_tiles = pl.cdiv(B_pad, tm)

    # Weights/biases: full-array blocks, constant block index -> VMEM-resident.
    const_spec = lambda a: pl.BlockSpec(a.shape, lambda i: (0,) * a.ndim)

    flops_per_row = 2 * (D * 256 + 256 * 128 + 128 * _HID_PAD + _HID_PAD * _OUT_PAD)
    weight_bytes = 2 * (D * 256 + 256 * 128 + 128 * _HID_PAD + _HID_PAD * _OUT_PAD)
    cost = pl.CostEstimate(
        flops=B_pad * flops_per_row,
        transcendentals=B_pad * _OUT_PAD,                       # exp in log_softmax
        bytes_accessed=B_pad * (D * 4 + _OUT_PAD * 4) + weight_bytes,
    )

    out = pl.pallas_call(
        _mlp_kernel,
        out_shape=jax.ShapeDtypeStruct((B_pad, _OUT_PAD), jnp.float32),
        grid_spec=pltpu.PrefetchScalarGridSpec(
            num_scalar_prefetch=0,
            grid=(n_tiles,),
            in_specs=[pl.BlockSpec((tm, D), lambda i: (i, 0)),
                      const_spec(w1), const_spec(b1),
                      const_spec(w2), const_spec(b2),
                      const_spec(w3), const_spec(b3),
                      const_spec(w4), const_spec(b4)],
            out_specs=pl.BlockSpec((tm, _OUT_PAD), lambda i: (i, 0)),
        ),
        compiler_params=pltpu.CompilerParams(
            dimension_semantics=("parallel",),        # v7x: split batch over 2 TCs
            vmem_limit_bytes=48 * 1024 * 1024,        # ~28 MiB used at tm=2048; fits v7x's 64 MiB
        ),
        cost_estimate=cost,
    )(x_flat, w1, b1, w2, b2, w3, b3, w4, b4)

    return out[:B, :10]


def init_params(key):
    """Deterministic init; weights stored (in, out) f32, biases (1, out) f32."""
    sizes = [(784, 256), (256, 128), (128, 64), (64, 10)]
    params = []
    for fan_in, fan_out in sizes:
        kw, kb, key = jax.random.split(key, 3)
        bound = 1.0 / jnp.sqrt(fan_in)  # matches nn.Linear default bound
        w = jax.random.uniform(kw, (fan_in, fan_out), jnp.float32, -bound, bound)
        b = jax.random.uniform(kb, (1, fan_out), jnp.float32, -bound, bound)
        params += [w, b]
    return tuple(params)


def _reference_forward(x, params):
    """Pure-JAX reference mirroring the kernel's bf16-input / f32-acc math."""
    w1, b1, w2, b2, w3, b3, w4, b4 = params
    bf16 = jnp.bfloat16
    h = x.reshape(x.shape[0], -1).astype(bf16)
    h = jnp.maximum(jnp.dot(h, w1.astype(bf16),
                            preferred_element_type=jnp.float32) + b1, 0.0).astype(bf16)
    h = jnp.maximum(jnp.dot(h, w2.astype(bf16),
                            preferred_element_type=jnp.float32) + b2, 0.0).astype(bf16)
    h = jnp.maximum(jnp.dot(h, w3.astype(bf16),
                            preferred_element_type=jnp.float32) + b3, 0.0).astype(bf16)
    logits = jnp.dot(h, w4.astype(bf16), preferred_element_type=jnp.float32) + b4
    return jax.nn.log_softmax(logits, axis=1)


if __name__ == "__main__":
    key = jax.random.PRNGKey(0)
    kx, kp = jax.random.split(key)
    B = 2
    x = jax.random.normal(kx, (B, 1, 28, 28), jnp.float32)  # NCHW, like MNIST
    params = init_params(kp)

    out = classifier_forward(x, params)
    out = jax.block_until_ready(out)

    ref = _reference_forward(x, params)
    assert out.shape == (B, 10)
    assert bool(jnp.all(jnp.isfinite(out))), "non-finite log-probs"
    assert jnp.allclose(out, ref, atol=2e-3, rtol=2e-3), "mismatch vs reference"
    # log_softmax rows should exp-sum to 1
    assert jnp.allclose(jnp.sum(jnp.exp(out), axis=1), 1.0, atol=1e-4)

    print("KERNEL_OK")
</pallas_src>

<mosaic_0001>
module attributes {stable_mosaic.version = 11 : i64} {
  func.func @_mlp_kernel(%arg0: i32, %arg1: memref<8x784xf32, #tpu.memory_space<vmem>>, %arg2: memref<784x256xbf16, #tpu.memory_space<vmem>>, %arg3: memref<1x256xf32, #tpu.memory_space<vmem>>, %arg4: memref<256x128xbf16, #tpu.memory_space<vmem>>, %arg5: memref<1x128xf32, #tpu.memory_space<vmem>>, %arg6: memref<128x128xbf16, #tpu.memory_space<vmem>>, %arg7: memref<1x128xf32, #tpu.memory_space<vmem>>, %arg8: memref<128x128xbf16, #tpu.memory_space<vmem>>, %arg9: memref<1x128xf32, #tpu.memory_space<vmem>>, %arg10: memref<8x128xf32, #tpu.memory_space<vmem>>) attributes {dimension_semantics = [#tpu.dimension_semantics<parallel>], iteration_bounds = array<i64: 1>, scalar_prefetch = 0 : i64, scratch_operands = 0 : i64, tpu.core_type = #tpu.core_type<tc>, window_params = [{transform_indices = @transform_0, window_bounds = array<i64: 8, 784>}, {pipeline_mode = #tpu.pipeline_mode<synchronous>, transform_indices = @transform_1, window_bounds = array<i64: 784, 256>}, {pipeline_mode = #tpu.pipeline_mode<synchronous>, transform_indices = @transform_2, window_bounds = array<i64: 1, 256>}, {pipeline_mode = #tpu.pipeline_mode<synchronous>, transform_indices = @transform_3, window_bounds = array<i64: 256, 128>}, {pipeline_mode = #tpu.pipeline_mode<synchronous>, transform_indices = @transform_4, window_bounds = array<i64: 1, 128>}, {pipeline_mode = #tpu.pipeline_mode<synchronous>, transform_indices = @transform_5, window_bounds = array<i64: 128, 128>}, {pipeline_mode = #tpu.pipeline_mode<synchronous>, transform_indices = @transform_6, window_bounds = array<i64: 1, 128>}, {pipeline_mode = #tpu.pipeline_mode<synchronous>, transform_indices = @transform_7, window_bounds = array<i64: 128, 128>}, {pipeline_mode = #tpu.pipeline_mode<synchronous>, transform_indices = @transform_8, window_bounds = array<i64: 1, 128>}, {transform_indices = @transform_9, window_bounds = array<i64: 8, 128>}]} {
    %c0 = arith.constant 0 : index
    %c0_0 = arith.constant 0 : index
    %0 = vector.load %arg1[%c0, %c0_0] : memref<8x784xf32, #tpu.memory_space<vmem>>, vector<8x784xf32>
    %1 = arith.truncf %0 : vector<8x784xf32> to vector<8x784xbf16>
    %c0_1 = arith.constant 0 : index
    %c0_2 = arith.constant 0 : index
    %2 = vector.load %arg2[%c0_1, %c0_2] : memref<784x256xbf16, #tpu.memory_space<vmem>>, vector<784x256xbf16>
    %cst = arith.constant dense<0.000000e+00> : vector<8x256xf32>
    %3 = tpu.matmul %1, %2, %cst {dimension_numbers = #tpu.dot_dimension_numbers<[1], [0], [0], [1], [0, 0, 1, 1], [], []>} : vector<8x784xbf16>, vector<784x256xbf16>, vector<8x256xf32> -> vector<8x256xf32>
    %c0_3 = arith.constant 0 : index
    %c0_4 = arith.constant 0 : index
    %4 = vector.load %arg3[%c0_3, %c0_4] : memref<1x256xf32, #tpu.memory_space<vmem>>, vector<1x256xf32>
    %5 = vector.broadcast %4 : vector<1x256xf32> to vector<8x256xf32>
    %6 = arith.addf %3, %5 : vector<8x256xf32>
    %cst_5 = arith.constant 0.000000e+00 : f32
    %7 = vector.broadcast %cst_5 : f32 to vector<8x256xf32>
    %8 = arith.maximumf %6, %7 : vector<8x256xf32>
    %9 = arith.truncf %8 : vector<8x256xf32> to vector<8x256xbf16>
    %c0_6 = arith.constant 0 : index
    %c0_7 = arith.constant 0 : index
    %10 = vector.load %arg4[%c0_6, %c0_7] : memref<256x128xbf16, #tpu.memory_space<vmem>>, vector<256x128xbf16>
    %cst_8 = arith.constant dense<0.000000e+00> : vector<8x128xf32>
    %11 = tpu.matmul %9, %10, %cst_8 {dimension_numbers = #tpu.dot_dimension_numbers<[1], [0], [0], [1], [0, 0, 1, 1], [], []>} : vector<8x256xbf16>, vector<256x128xbf16>, vector<8x128xf32> -> vector<8x128xf32>
    %c0_9 = arith.constant 0 : index
    %c0_10 = arith.constant 0 : index
    %12 = vector.load %arg5[%c0_9, %c0_10] : memref<1x128xf32, #tpu.memory_space<vmem>>, vector<1x128xf32>
    %13 = vector.broadcast %12 : vector<1x128xf32> to vector<8x128xf32>
    %14 = arith.addf %11, %13 : vector<8x128xf32>
    %cst_11 = arith.constant 0.000000e+00 : f32
    %15 = vector.broadcast %cst_11 : f32 to vector<8x128xf32>
    %16 = arith.maximumf %14, %15 : vector<8x128xf32>
    %17 = arith.truncf %16 : vector<8x128xf32> to vector<8x128xbf16>
    %c0_12 = arith.constant 0 : index
    %c0_13 = arith.constant 0 : index
    %18 = vector.load %arg6[%c0_12, %c0_13] : memref<128x128xbf16, #tpu.memory_space<vmem>>, vector<128x128xbf16>
    %cst_14 = arith.constant dense<0.000000e+00> : vector<8x128xf32>
    %19 = tpu.matmul %17, %18, %cst_14 {dimension_numbers = #tpu.dot_dimension_numbers<[1], [0], [0], [1], [0, 0, 1, 1], [], []>} : vector<8x128xbf16>, vector<128x128xbf16>, vector<8x128xf32> -> vector<8x128xf32>
    %c0_15 = arith.constant 0 : index
    %c0_16 = arith.constant 0 : index
    %20 = vector.load %arg7[%c0_15, %c0_16] : memref<1x128xf32, #tpu.memory_space<vmem>>, vector<1x128xf32>
    %21 = vector.broadcast %20 : vector<1x128xf32> to vector<8x128xf32>
    %22 = arith.addf %19, %21 : vector<8x128xf32>
    %cst_17 = arith.constant 0.000000e+00 : f32
    %23 = vector.broadcast %cst_17 : f32 to vector<8x128xf32>
    %24 = arith.maximumf %22, %23 : vector<8x128xf32>
    %25 = arith.truncf %24 : vector<8x128xf32> to vector<8x128xbf16>
    %c0_18 = arith.constant 0 : index
    %c0_19 = arith.constant 0 : index
    %26 = vector.load %arg8[%c0_18, %c0_19] : memref<128x128xbf16, #tpu.memory_space<vmem>>, vector<128x128xbf16>
    %cst_20 = arith.constant dense<0.000000e+00> : vector<8x128xf32>
    %27 = tpu.matmul %25, %26, %cst_20 {dimension_numbers = #tpu.dot_dimension_numbers<[1], [0], [0], [1], [0, 0, 1, 1], [], []>} : vector<8x128xbf16>, vector<128x128xbf16>, vector<8x128xf32> -> vector<8x128xf32>
    %c0_21 = arith.constant 0 : index
    %c0_22 = arith.constant 0 : index
    %28 = vector.load %arg9[%c0_21, %c0_22] : memref<1x128xf32, #tpu.memory_space<vmem>>, vector<1x128xf32>
    %29 = vector.broadcast %28 : vector<1x128xf32> to vector<8x128xf32>
    %30 = arith.addf %27, %29 : vector<8x128xf32>
    %cst_23 = arith.constant dense<0xFF800000> : vector<8xf32>
    %31 = vector.multi_reduction <maximumf>, %30, %cst_23 [1] : vector<8x128xf32> to vector<8xf32>
    %32 = vector.shape_cast %31 : vector<8xf32> to vector<8x1xf32>
    %33 = vector.broadcast %32 : vector<8x1xf32> to vector<8x128xf32>
    %34 = arith.subf %30, %33 : vector<8x128xf32>
    %35 = math.exp %34 : vector<8x128xf32>
    %cst_24 = arith.constant dense<0.000000e+00> : vector<8xf32>
    %36 = vector.multi_reduction <add>, %35, %cst_24 [1] : vector<8x128xf32> to vector<8xf32>
    %37 = vector.shape_cast %36 : vector<8xf32> to vector<8x1xf32>
    %38 = math.log %37 : vector<8x1xf32>
    %39 = vector.broadcast %38 : vector<8x1xf32> to vector<8x128xf32>
    %40 = arith.subf %34, %39 : vector<8x128xf32>
    %c0_25 = arith.constant 0 : index
    %c0_26 = arith.constant 0 : index
    %41 = vector.load %arg10[%c0_25, %c0_26] : memref<8x128xf32, #tpu.memory_space<vmem>>, vector<8x128xf32>
    tpu.vector_store %arg10[%c0_25, %c0_26], %40 {strides = array<i32>} : memref<8x128xf32, #tpu.memory_space<vmem>>, vector<8x128xf32>,
    return
  }
  func.func @transform_0(%arg0: i32) -> (i32, i32) {
    %c0_i32 = arith.constant 0 : i32
    %c0_i32_0 = arith.constant 0 : i32
    return %arg0, %c0_i32 : i32, i32
  }
  func.func @transform_1(%arg0: i32) -> (i32, i32) {
    %c0_i32 = arith.constant 0 : i32
    %c0_i32_0 = arith.constant 0 : i32
    %c0_i32_1 = arith.constant 0 : i32
    return %c0_i32, %c0_i32_0 : i32, i32
  }
  func.func @transform_2(%arg0: i32) -> (i32, i32) {
    %c0_i32 = arith.constant 0 : i32
    %c0_i32_0 = arith.constant 0 : i32
    %c0_i32_1 = arith.constant 0 : i32
    return %c0_i32, %c0_i32_0 : i32, i32
  }
  func.func @transform_3(%arg0: i32) -> (i32, i32) {
    %c0_i32 = arith.constant 0 : i32
    %c0_i32_0 = arith.constant 0 : i32
    %c0_i32_1 = arith.constant 0 : i32
    return %c0_i32, %c0_i32_0 : i32, i32
  }
  func.func @transform_4(%arg0: i32) -> (i32, i32) {
    %c0_i32 = arith.constant 0 : i32
    %c0_i32_0 = arith.constant 0 : i32
    %c0_i32_1 = arith.constant 0 : i32
    return %c0_i32, %c0_i32_0 : i32, i32
  }
  func.func @transform_5(%arg0: i32) -> (i32, i32) {
    %c0_i32 = arith.constant 0 : i32
    %c0_i32_0 = arith.constant 0 : i32
    %c0_i32_1 = arith.constant 0 : i32
    return %c0_i32, %c0_i32_0 : i32, i32
  }
  func.func @transform_6(%arg0: i32) -> (i32, i32) {
    %c0_i32 = arith.constant 0 : i32
    %c0_i32_0 = arith.constant 0 : i32
    %c0_i32_1 = arith.constant 0 : i32
    return %c0_i32, %c0_i32_0 : i32, i32
  }
  func.func @transform_7(%arg0: i32) -> (i32, i32) {
    %c0_i32 = arith.constant 0 : i32
    %c0_i32_0 = arith.constant 0 : i32
    %c0_i32_1 = arith.constant 0 : i32
    return %c0_i32, %c0_i32_0 : i32, i32
  }
  func.func @transform_8(%arg0: i32) -> (i32, i32) {
    %c0_i32 = arith.constant 0 : i32
    %c0_i32_0 = arith.constant 0 : i32
    %c0_i32_1 = arith.constant 0 : i32
    return %c0_i32, %c0_i32_0 : i32, i32
  }
  func.func @transform_9(%arg0: i32) -> (i32, i32) {
    %c0_i32 = arith.constant 0 : i32
    %c0_i32_0 = arith.constant 0 : i32
    return %arg0, %c0_i32 : i32, i32
  }
}

</mosaic_0001>

<bundles_post_ra>
// kernel: tpu_custom_call.1
= control target key start
LH: loop header
LB: loop body
LE: loop exit
PB: predicated region body
PF: predicated region fallthrough
CT: control target
= control target key end

     0   :  { %14 = vsyncpa [#allocation3], 0  ;;  %s2246_s0 = inlined_call_operand.hbm [shape: f32[8,784], index: 0, kind: input, shape index: {}]   ;;  %s2247_s1 = inlined_call_operand.hbm [shape: bf16[784,256], index: 1, kind: input, shape index: {}]   ;;  %s2248_s2 = inlined_call_operand.hbm [shape: f32[1,256], index: 2, kind: input, shape index: {}]   ;;  %s2249_s3 = inlined_call_operand.hbm [shape: bf16[256,128], index: 3, kind: input, shape index: {}]   ;;  %s2250_s4 = inlined_call_operand.vmem [shape: f32[1,128], index: 4, kind: input, shape index: {}]   ;;  %s2251_s5 = inlined_call_operand.hbm [shape: bf16[128,128], index: 5, kind: input, shape index: {}]   ;;  %s2252_s6 = inlined_call_operand.vmem [shape: f32[1,128], index: 6, kind: input, shape index: {}]   ;;  %s2253_s7 = inlined_call_operand.hbm [shape: bf16[128,128], index: 7, kind: input, shape index: {}]   ;;  %s2254_s8 = inlined_call_operand.vmem [shape: f32[1,128], index: 8, kind: input, shape index: {}]   ;;  %s2255_s9 = inlined_call_operand.hbm [shape: f32[8,128], index: 9, kind: output, shape index: {}]  }
   0x1   :  { %15 = vsyncpa [#allocation6], 0 }
   0x2   :  { %16 = vsyncpa [#allocation9], 0 }
   0x3   :  { %17 = vsyncpa [#allocation12], 0  ;;  %s34_s11 = sshll.u32 %s2247_s1, 4  ;;  %s35_s11 = int_to_ptr.hbm [resolvable:$true] %s34_s11 }
   0x4   :  { %18 = vsyncpa [#allocation4], 0  ;;  %s2125_s12 = smov [#allocation5]   ;;  %s58_s16 = sshll.u32 %s2249_s3, 4  ;;  %s59_s16 = int_to_ptr.hbm [resolvable:$true] %s58_s16 }
   0x5   :  { %s36_s13 = sshll.u32 %s2125_s12, 4  ;;  %s2126_s17 = smov 128   ;;  %s37_s13 = int_to_ptr.vmem [resolvable:$true] %s36_s13 }
   0x6   :  { %s2127_s18 = smov 8   ;;  %s2128_s19 = smov [#allocation8]  }
   0x7   :  { %42 = dma.hbm_to_vmem [thread:$0]  %s35_s11, 12544, %s37_s13, [#allocation6], %s2126_s17, %s2126_s17, %s2127_s18  }
   0x8   :  { %s60_s20 = sshll.u32 %s2128_s19, 4  ;;  %s2129_s21 = smov 64   ;;  %s61_s20 = int_to_ptr.vmem [resolvable:$true] %s60_s20 }
   0x9   :  { %s2130_s22 = smov 4   ;;  %s24_s24 = sshll.u32 %s2246_s0, 4  ;;  %s25_s24 = int_to_ptr.hbm [resolvable:$true] %s24_s24 }
   0xa   :  { %66 = dma.hbm_to_vmem [thread:$0]  %s59_s16, 2048, %s61_s20, [#allocation9], %s2129_s21, %s2129_s21, %s2130_s22  }
   0xb   :  { %s2131_s25 = smov [#allocation2]   ;;  %s48_s28 = sshll.u32 %s2248_s2, 4  ;;  %s49_s28 = int_to_ptr.hbm [resolvable:$true] %s48_s28 }
   0xc   :  { %s26_s26 = sshll.u32 %s2131_s25, 4  ;;  %s2132_s29 = smov [#allocation7]   ;;  %s27_s26 = int_to_ptr.vmem [resolvable:$true] %s26_s26 }
   0xd   :  { %29 = dma.hbm_to_vmem [thread:$0]  %s25_s24, 896, %s27_s26, [#allocation3]  }
   0xe   :  { %s50_s30 = sshll.u32 %s2132_s29, 4  ;;  %s73_s12 = sshll.u32 %s2251_s5, 4  ;;  %s51_s30 = int_to_ptr.vmem [resolvable:$true] %s50_s30  ;;  %s74_s12 = int_to_ptr.hbm [resolvable:$true] %s73_s12 }
   0xf   :  { %53 = dma.hbm_to_vmem [thread:$0]  %s49_s28, 32, %s51_s30, [#allocation6]  }
  0x10   :  { %s88_s14 = sshll.u32 %s2253_s7, 4  ;;  %s2133_s15 = smov [#allocation10]   ;;  %s89_s14 = int_to_ptr.hbm [resolvable:$true] %s88_s14 }
  0x11   :  { %s75_s16 = sshll.u32 %s2133_s15, 4  ;;  %s2134_s2 = smov [#allocation11]   ;;  %s76_s16 = int_to_ptr.vmem [resolvable:$true] %s75_s16 }
  0x12   :  { %81 = dma.hbm_to_vmem [thread:$0]  %s74_s12, 1024, %s76_s16, [#allocation9], %s2129_s21, %s2129_s21, %s2130_s22  }
  0x13   :  { %s90_s17 = sshll.u32 %s2134_s2, 4  ;;  %s91_s17 = int_to_ptr.vmem [resolvable:$true] %s90_s17 }
  0x14   :  { %96 = dma.hbm_to_vmem [thread:$0]  %s89_s14, 1024, %s91_s17, [#allocation12], %s2129_s21, %s2129_s21, %s2130_s22  }
  0x15   :  { %2115 = dma.done.wait [#allocation3], 896  }
  0x16   :  { %2116 = vsyncadd [#allocation3], 4294966400 }
  0x17   :  { %2117 = dma.done.wait [#allocation6], 12576  }
  0x18   :  { %2118 = vsyncadd [#allocation6], 4294954720 }
  0x19   :  { %2119 = dma.done.wait [#allocation9], 3072  }
  0x1a   :  { %2120 = vsyncadd [#allocation9], 4294964224 }
  0x1b   :  { %2121 = dma.done.wait [#allocation12], 1024  }
  0x1c   :  { %2122 = vsyncadd [#allocation12], 4294966272  ;;  %v1335_v0 = vld [vmem:[#allocation5 + $0x70] sm:$0xf]  ;;  %v1814_v1 = vld [vmem:[#allocation5 + $0x74] sm:$0xf0] }
  0x1d   :  { %v1463_v2 = vld [vmem:[#allocation5 + $0x170] sm:$0xf]  ;;  %v1336_v3 = vor.u32 %v1814_v1, %v1335_v0  ;;  %v1846_v4 = vld [vmem:[#allocation5 + $0x174] sm:$0xf0]  ;;  %v1327_v11 = vld [vmem:[#allocation5 + $0x60] sm:$0xf] }
  0x1e   :  { %v1527_v5 = vld [vmem:[#allocation5 + $0x1f0] sm:$0xf]  ;;  %v1862_v6 = vld [vmem:[#allocation5 + $0x1f4] sm:$0xf0]  ;;  %v1464_v7 = vor.u32 %v1846_v4, %v1463_v2  ;;  %v1812_v13 = vld [vmem:[#allocation5 + $0x64] sm:$0xf0] }
  0x1f   :  { %v1528_v8 = vor.u32 %v1862_v6, %v1527_v5  ;;  %v1399_v9 = vld [vmem:[#allocation5 + $0xf0] sm:$0xf]  ;;  %v1830_v10 = vld [vmem:[#allocation5 + $0xf4] sm:$0xf0]  ;;  %736 = vmatpush.bf16.msra.mxu0 %v1336_v3  ;;  %v1455_v14 = vld [vmem:[#allocation5 + $0x160] sm:$0xf]  ;;  %v1328_v16 = vor.u32 %v1812_v13, %v1327_v11 }
  0x20   :  { %v1400_v12 = vor.u32 %v1830_v10, %v1399_v9  ;;  %v1844_v15 = vld [vmem:[#allocation5 + $0x164] sm:$0xf0]  ;;  %762 = vmatpush.bf16.msra.mxu2 %v1464_v7  ;;  %v1519_v18 = vld [vmem:[#allocation5 + $0x1e0] sm:$0xf]  ;;  %v1319_v23 = vld [vmem:[#allocation5 + $0x50] sm:$0xf] }
  0x21   :  { %775 = vmatpush.bf16.msra.mxu3 %v1528_v8  ;;  %v1456_v17 = vor.u32 %v1844_v15, %v1455_v14  ;;  %v1860_v19 = vld [vmem:[#allocation5 + $0x1e4] sm:$0xf0]  ;;  %v1391_v20 = vld [vmem:[#allocation5 + $0xe0] sm:$0xf]  ;;  %v1810_v24 = vld [vmem:[#allocation5 + $0x54] sm:$0xf0] }
  0x22   :  { %749 = vmatpush.bf16.msra.mxu1 %v1400_v12  ;;  %v1520_v21 = vor.u32 %v1860_v19, %v1519_v18  ;;  %v1828_v22 = vld [vmem:[#allocation5 + $0xe4] sm:$0xf0]  ;;  %v1447_v26 = vld [vmem:[#allocation5 + $0x150] sm:$0xf]  ;;  %v1842_v27 = vld [vmem:[#allocation5 + $0x154] sm:$0xf0]  ;;  %v1320_v29 = vor.u32 %v1810_v24, %v1319_v23 }
  0x23   :  { %v1392_v25 = vor.u32 %v1828_v22, %v1391_v20  ;;  %v1511_v28 = vld [vmem:[#allocation5 + $0x1d0] sm:$0xf]  ;;  %737 = vmatpush.bf16.msra.mxu0 %v1328_v16  ;;  %v1858_v30 = vld [vmem:[#allocation5 + $0x1d4] sm:$0xf0]  ;;  %v1448_v33 = vor.u32 %v1842_v27, %v1447_v26  ;;  %v1311_v35 = vld [vmem:[#allocation5 + $0x40] sm:$0xf] }
  0x24   :  { %v1383_v31 = vld [vmem:[#allocation5 + $0xd0] sm:$0xf]  ;;  %v1826_v32 = vld [vmem:[#allocation5 + $0xd4] sm:$0xf0]  ;;  %763 = vmatpush.bf16.msra.mxu2 %v1456_v17  ;;  %v1512_v34 = vor.u32 %v1858_v30, %v1511_v28  ;;  %v1808_v36 = vld [vmem:[#allocation5 + $0x44] sm:$0xf0] }
  0x25   :  { %776 = vmatpush.bf16.msra.mxu3 %v1520_v21  ;;  %v1439_v37 = vld [vmem:[#allocation5 + $0x140] sm:$0xf]  ;;  %v1384_v38 = vor.u32 %v1826_v32, %v1383_v31  ;;  %v1840_v39 = vld [vmem:[#allocation5 + $0x144] sm:$0xf0]  ;;  %v1312_v44 = vor.u32 %v1808_v36, %v1311_v35  ;;  %v1303_v47 = vld [vmem:[#allocation5 + $0x30] sm:$0xf] }
  0x26   :  { %750 = vmatpush.bf16.msra.mxu1 %v1392_v25  ;;  %v1503_v40 = vld [vmem:[#allocation5 + $0x1c0] sm:$0xf]  ;;  %v1856_v41 = vld [vmem:[#allocation5 + $0x1c4] sm:$0xf0]  ;;  %v1440_v45 = vor.u32 %v1840_v39, %v1439_v37  ;;  %v1806_v48 = vld [vmem:[#allocation5 + $0x34] sm:$0xf0] }
  0x27   :  { %v1375_v42 = vld [vmem:[#allocation5 + $0xc0] sm:$0xf]  ;;  %v1824_v43 = vld [vmem:[#allocation5 + $0xc4] sm:$0xf0]  ;;  %738 = vmatpush.bf16.msra.mxu0 %v1320_v29  ;;  %v1504_v46 = vor.u32 %v1856_v41, %v1503_v40  ;;  %v1431_v49 = vld [vmem:[#allocation5 + $0x130] sm:$0xf]  ;;  %v1304_v56 = vor.u32 %v1806_v48, %v1303_v47 }
  0x28   :  { %764 = vmatpush.bf16.msra.mxu2 %v1448_v33  ;;  %v1376_v50 = vor.u32 %v1824_v43, %v1375_v42  ;;  %v1838_v51 = vld [vmem:[#allocation5 + $0x134] sm:$0xf0]  ;;  %v1495_v52 = vld [vmem:[#allocation5 + $0x1b0] sm:$0xf]  ;;  %v1295_v59 = vld [vmem:[#allocation5 + $0x20] sm:$0xf] }
  0x29   :  { %777 = vmatpush.bf16.msra.mxu3 %v1512_v34  ;;  %v1854_v53 = vld [vmem:[#allocation5 + $0x1b4] sm:$0xf0]  ;;  %v1367_v54 = vld [vmem:[#allocation5 + $0xb0] sm:$0xf]  ;;  %v1432_v57 = vor.u32 %v1838_v51, %v1431_v49  ;;  %v1804_v60 = vld [vmem:[#allocation5 + $0x24] sm:$0xf0] }
  0x2a   :  { %751 = vmatpush.bf16.msra.mxu1 %v1384_v38  ;;  %v1822_v55 = vld [vmem:[#allocation5 + $0xb4] sm:$0xf0]  ;;  %v1496_v58 = vor.u32 %v1854_v53, %v1495_v52  ;;  %v1423_v61 = vld [vmem:[#allocation5 + $0x120] sm:$0xf]  ;;  %v1836_v63 = vld [vmem:[#allocation5 + $0x124] sm:$0xf0]  ;;  %v1296_v4 = vor.u32 %v1804_v60, %v1295_v59 }
  0x2b   :  { %739 = vmatpush.bf16.msra.mxu0 %v1312_v44  ;;  %v1368_v62 = vor.u32 %v1822_v55, %v1367_v54  ;;  %v1487_v0 = vld [vmem:[#allocation5 + $0x1a0] sm:$0xf]  ;;  %v1852_v1 = vld [vmem:[#allocation5 + $0x1a4] sm:$0xf0]  ;;  %v1424_v5 = vor.u32 %v1836_v63, %v1423_v61  ;;  %v1287_v7 = vld [vmem:[#allocation5 + $0x10] sm:$0xf] }
  0x2c   :  { %765 = vmatpush.bf16.msra.mxu2 %v1440_v45  ;;  %v1359_v2 = vld [vmem:[#allocation5 + $0xa0] sm:$0xf]  ;;  %v1820_v3 = vld [vmem:[#allocation5 + $0xa4] sm:$0xf0]  ;;  %v1488_v6 = vor.u32 %v1852_v1, %v1487_v0  ;;  %v1802_v8 = vld [vmem:[#allocation5 + $0x14] sm:$0xf0] }
  0x2d   :  { %778 = vmatpush.bf16.msra.mxu3 %v1504_v46  ;;  %v1415_v9 = vld [vmem:[#allocation5 + $0x110] sm:$0xf]  ;;  %v1360_v10 = vor.u32 %v1820_v3, %v1359_v2  ;;  %v1834_v11 = vld [vmem:[#allocation5 + $0x114] sm:$0xf0]  ;;  %v1288_v16 = vor.u32 %v1802_v8, %v1287_v7  ;;  %v1279_v17 = vld [vmem:[#allocation5] sm:$0xf] }
  0x2e   :  { %752 = vmatpush.bf16.msra.mxu1 %v1376_v50  ;;  %v1479_v12 = vld [vmem:[#allocation5 + $0x190] sm:$0xf]  ;;  %v1850_v13 = vld [vmem:[#allocation5 + $0x194] sm:$0xf0]  ;;  %v1800_v18 = vld [vmem:[#allocation5 + $0x4] sm:$0xf0]  ;;  %v1416_v20 = vor.u32 %v1834_v11, %v1415_v9 }
  0x2f   :  { %740 = vmatpush.bf16.msra.mxu0 %v1304_v56  ;;  %v1351_v14 = vld [vmem:[#allocation5 + $0x90] sm:$0xf]  ;;  %v1818_v15 = vld [vmem:[#allocation5 + $0x94] sm:$0xf0]  ;;  %v1407_v19 = vld [vmem:[#allocation5 + $0x100] sm:$0xf]  ;;  %v1480_v21 = vor.u32 %v1850_v13, %v1479_v12  ;;  %v1280_v32 = vor.u32 %v1800_v18, %v1279_v17 }
  0x30   :  { %766 = vmatpush.bf16.msra.mxu2 %v1432_v57  ;;  %v1832_v22 = vld [vmem:[#allocation5 + $0x104] sm:$0xf0]  ;;  %v1471_v23 = vld [vmem:[#allocation5 + $0x180] sm:$0xf]  ;;  %v1352_v25 = vor.u32 %v1818_v15, %v1351_v14  ;;  %v1591_v26 = vld [vmem:[#allocation5 + $0x270] sm:$0xf] }
  0x31   :  { %779 = vmatpush.bf16.msra.mxu3 %v1496_v58  ;;  %v1848_v24 = vld [vmem:[#allocation5 + $0x184] sm:$0xf0]  ;;  %v1878_v27 = vld [vmem:[#allocation5 + $0x274] sm:$0xf0]  ;;  %v1813_v28 = vld [vmem:[#allocation5 + $0x74] sm:$0xf]  ;;  %v1408_v36 = vor.u32 %v1832_v22, %v1407_v19 }
  0x32   :  { %753 = vmatpush.bf16.msra.mxu1 %v1368_v62  ;;  %v1337_v29 = vld [vmem:[#allocation5 + $0x78] sm:$0xf0]  ;;  %v1343_v30 = vld [vmem:[#allocation5 + $0x80] sm:$0xf]  ;;  %v1816_v31 = vld [vmem:[#allocation5 + $0x84] sm:$0xf0]  ;;  %v1472_v37 = vor.u32 %v1848_v24, %v1471_v23  ;;  %v1592_v41 = vor.u32 %v1878_v27, %v1591_v26 }
  0x33   :  { %741 = vmatpush.bf16.msra.mxu0 %v1296_v4  ;;  %v126_v33 = vld [vmem:[#allocation2 + $0x10] sm:$0xff]  ;;  %v1663_v34 = vld [vmem:[#allocation5 + $0x300] sm:$0xf]  ;;  %v1896_v35 = vld [vmem:[#allocation5 + $0x304] sm:$0xf0]  ;;  %v1340_v42 = vor.u32 %v1813_v28, %v1337_v29  ;;  %v1344_v46 = vor.u32 %v1816_v31, %v1343_v30  ;;  %vm732_vm0 = vcmask 130048  }
  0x34   :  { %767 = vmatpush.bf16.msra.mxu2 %v1424_v5  ;;  %v1655_v38 = vld [vmem:[#allocation5 + $0x2f0] sm:$0xf]  ;;  %v1894_v39 = vld [vmem:[#allocation5 + $0x2f4] sm:$0xf0]  ;;  %v1829_v40 = vld [vmem:[#allocation5 + $0xf4] sm:$0xf]  ;;  %v1664_v47 = vor.u32 %v1896_v35, %v1663_v34  ;;  %v2204_v51 = vpack.c.bf16 %v126_v33, %v126_v33 }
  0x35   :  { %780 = vmatpush.bf16.msra.mxu3 %v1488_v6  ;;  %v1401_v43 = vld [vmem:[#allocation5 + $0xf8] sm:$0xf0]  ;;  %v1583_v44 = vld [vmem:[#allocation5 + $0x260] sm:$0xf]  ;;  %v124_v45 = vld [vmem:[#allocation2] sm:$0xff]  ;;  %v1656_v52 = vor.u32 %v1894_v39, %v1655_v38  ;;  %s1264_s23 = sshll.u32 %s2255_s9, 4  ;;  %s1265_s23 = int_to_ptr.hbm [resolvable:$true] %s1264_s23 }
  0x36   :  { %754 = vmatpush.bf16.msra.mxu1 %v1360_v10  ;;  %v1876_v48 = vld [vmem:[#allocation5 + $0x264] sm:$0xf0]  ;;  %v1811_v49 = vld [vmem:[#allocation5 + $0x64] sm:$0xf]  ;;  %v1329_v50 = vld [vmem:[#allocation5 + $0x68] sm:$0xf0]  ;;  %v1404_v55 = vor.u32 %v1829_v40, %v1401_v43  ;;  %v2206_v58 = vpack.c.bf16 %v124_v45, %v124_v45 }
  0x37   :  { %742 = vmatpush.bf16.msra.mxu0 %v1288_v16  ;;  %v127_v53 = vld [vmem:[#allocation2 + $0x18] sm:$0xff]  ;;  %v125_v54 = vld [vmem:[#allocation2 + $0x8] sm:$0xff]  ;;  %v1892_v57 = vld [vmem:[#allocation5 + $0x2e4] sm:$0xf0]  ;;  %v1584_v59 = vor.u32 %v1876_v48, %v1583_v44  ;;  %v1332_v60 = vor.u32 %v1811_v49, %v1329_v50 }
  0x38   :  { %768 = vmatpush.bf16.msra.mxu2 %v1416_v20  ;;  %v1647_v56 = vld [vmem:[#allocation5 + $0x2e0] sm:$0xf]  ;;  %v1827_v61 = vld [vmem:[#allocation5 + $0xe4] sm:$0xf]  ;;  %v1393_v62 = vld [vmem:[#allocation5 + $0xe8] sm:$0xf0]  ;;  %v2208_v3 = vpack.c.bf16 %v127_v53, %v127_v53  ;;  %v2210_v4 = vpack.c.bf16 %v125_v54, %v125_v54 }
  0x39   :  { %781 = vmatpush.bf16.msra.mxu3 %v1480_v21  ;;  %v1575_v63 = vld [vmem:[#allocation5 + $0x250] sm:$0xf]  ;;  %v1874_v0 = vld [vmem:[#allocation5 + $0x254] sm:$0xf0]  ;;  %v1809_v1 = vld [vmem:[#allocation5 + $0x54] sm:$0xf]  ;;  %v1648_v5 = vor.u32 %v1892_v57, %v1647_v56  ;;  %v1396_v6 = vor.u32 %v1827_v61, %v1393_v62 }
  0x3a   :  { %755 = vmatpush.bf16.msra.mxu1 %v1352_v25  ;;  %v1321_v2 = vld [vmem:[#allocation5 + $0x58] sm:$0xf0]  ;;  %v1639_v7 = vld [vmem:[#allocation5 + $0x2d0] sm:$0xf]  ;;  %v1890_v8 = vld [vmem:[#allocation5 + $0x2d4] sm:$0xf0]  ;;  %v1576_v9 = vor.u32 %v1874_v0, %v1575_v63 }
  0x3b   :  { %743 = vmatpush.bf16.msra.mxu0 %v1280_v32  ;;  %v1324_v10 = vor.u32 %v1809_v1, %v1321_v2  ;;  %v1825_v11 = vld [vmem:[#allocation5 + $0xd4] sm:$0xf]  ;;  %v1385_v12 = vld [vmem:[#allocation5 + $0xd8] sm:$0xf0]  ;;  %v1567_v13 = vld [vmem:[#allocation5 + $0x240] sm:$0xf]  ;;  %v1640_v17 = vor.u32 %v1890_v8, %v1639_v7 }
  0x3c   :  { %769 = vmatpush.bf16.msra.mxu2 %v1408_v36  ;;  %v1872_v14 = vld [vmem:[#allocation5 + $0x244] sm:$0xf0]  ;;  %v1807_v15 = vld [vmem:[#allocation5 + $0x44] sm:$0xf]  ;;  %v1313_v16 = vld [vmem:[#allocation5 + $0x48] sm:$0xf0]  ;;  %v1388_v18 = vor.u32 %v1825_v11, %v1385_v12 }
  0x3d   :  { %782 = vmatpush.bf16.msra.mxu3 %v1472_v37  ;;  %v1631_v19 = vld [vmem:[#allocation5 + $0x2c0] sm:$0xf]  ;;  %v1888_v20 = vld [vmem:[#allocation5 + $0x2c4] sm:$0xf0]  ;;  %v1568_v21 = vor.u32 %v1872_v14, %v1567_v13  ;;  %v1316_v22 = vor.u32 %v1807_v15, %v1313_v16  ;;  %v1823_v23 = vld [vmem:[#allocation5 + $0xc4] sm:$0xf] }
  0x3e   :  { %756 = vmatpush.bf16.msra.mxu1 %v1344_v46  ;;  %744 = vmatmul.bf16.vlgmr.msra.gmra.mxu0 %v2206_v58  ;;  %v1377_v24 = vld [vmem:[#allocation5 + $0xc8] sm:$0xf0]  ;;  %v1559_v25 = vld [vmem:[#allocation5 + $0x230] sm:$0xf]  ;;  %v1870_v26 = vld [vmem:[#allocation5 + $0x234] sm:$0xf0]  ;;  %v1632_v29 = vor.u32 %v1888_v20, %v1631_v19 }
  0x3f   :  { %788 = vmatpush.bf16.msrb.mxu0 %v1592_v41  ;;  %770 = vmatmul.bf16.vlgmr.msra.gmra.mxu2 %v2204_v51  ;;  %v1805_v27 = vld [vmem:[#allocation5 + $0x34] sm:$0xf]  ;;  %v1305_v28 = vld [vmem:[#allocation5 + $0x38] sm:$0xf0]  ;;  %v1380_v30 = vor.u32 %v1823_v23, %v1377_v24  ;;  %v1623_v31 = vld [vmem:[#allocation5 + $0x2b0] sm:$0xf]  ;;  %v1560_v34 = vor.u32 %v1870_v26, %v1559_v25 }
  0x40   :  { %821 = vmatpush.bf16.msrb.mxu2 %v1664_v47  ;;  %783 = vmatmul.bf16.vlgmr.msra.gmra.mxu3 %v2208_v3  ;;  %v1886_v32 = vld [vmem:[#allocation5 + $0x2b4] sm:$0xf0]  ;;  %v1308_v35 = vor.u32 %v1805_v27, %v1305_v28  ;;  %v1821_v36 = vld [vmem:[#allocation5 + $0xb4] sm:$0xf]  ;;  %v1369_v37 = vld [vmem:[#allocation5 + $0xb8] sm:$0xf0] }
  0x41   :  { %827 = vmatpush.bf16.msrb.mxu3 %v1340_v42  ;;  %757 = vmatmul.bf16.vlgmr.msra.gmra.mxu1 %v2210_v4  ;;  %v130_v33 = vld [vmem:[#allocation2 + $0x30] sm:$0xff]  ;;  %v1551_v38 = vld [vmem:[#allocation5 + $0x220] sm:$0xf]  ;;  %v1868_v39 = vld [vmem:[#allocation5 + $0x224] sm:$0xf0]  ;;  %v1624_v42 = vor.u32 %v1886_v32, %v1623_v31  ;;  %v1372_v44 = vor.u32 %v1821_v36, %v1369_v37 }
  0x42   :  { %801 = vmatpush.bf16.msrb.mxu1 %v1656_v52  ;;  %v1803_v40 = vld [vmem:[#allocation5 + $0x24] sm:$0xf]  ;;  %v1297_v41 = vld [vmem:[#allocation5 + $0x28] sm:$0xf0]  ;;  %v2216_v43 = vpack.c.bf16 %v130_v33, %v130_v33  ;;  %v1615_v45 = vld [vmem:[#allocation5 + $0x2a0] sm:$0xf]  ;;  %v1552_v47 = vor.u32 %v1868_v39, %v1551_v38 }
  0x43   :  { %789 = vmatpush.bf16.msrb.mxu0 %v1584_v59  ;;  %v1884_v46 = vld [vmem:[#allocation5 + $0x2a4] sm:$0xf0]  ;;  %v1300_v48 = vor.u32 %v1803_v40, %v1297_v41  ;;  %v1819_v49 = vld [vmem:[#allocation5 + $0xa4] sm:$0xf]  ;;  %v1361_v50 = vld [vmem:[#allocation5 + $0xa8] sm:$0xf0] }
  0x44   :  { %840 = vmatpush.bf16.msra.mxu2 %v1404_v55  ;;  %v1543_v52 = vld [vmem:[#allocation5 + $0x210] sm:$0xf]  ;;  %v1866_v53 = vld [vmem:[#allocation5 + $0x214] sm:$0xf0]  ;;  %v1801_v54 = vld [vmem:[#allocation5 + $0x14] sm:$0xf]  ;;  %v1616_v56 = vor.u32 %v1884_v46, %v1615_v45  ;;  %v1364_v57 = vor.u32 %v1819_v49, %v1361_v50 }
  0x45   :  { %828 = vmatpush.bf16.msrb.mxu3 %v1332_v60  ;;  %v1289_v55 = vld [vmem:[#allocation5 + $0x18] sm:$0xf0]  ;;  %v1607_v59 = vld [vmem:[#allocation5 + $0x290] sm:$0xf]  ;;  %v1882_v60 = vld [vmem:[#allocation5 + $0x294] sm:$0xf0]  ;;  %v1544_v62 = vor.u32 %v1866_v53, %v1543_v52 }
  0x46   :  { %802 = vmatpush.bf16.msrb.mxu1 %v1648_v5  ;;  %v1817_v61 = vld [vmem:[#allocation5 + $0x94] sm:$0xf]  ;;  %v1292_v63 = vor.u32 %v1801_v54, %v1289_v55  ;;  %v1353_v0 = vld [vmem:[#allocation5 + $0x98] sm:$0xf0]  ;;  %v1535_v1 = vld [vmem:[#allocation5 + $0x200] sm:$0xf]  ;;  %v1608_v8 = vor.u32 %v1882_v60, %v1607_v59 }
  0x47   :  { %790 = vmatpush.bf16.msrb.mxu0 %v1576_v9  ;;  %v1864_v2 = vld [vmem:[#allocation5 + $0x204] sm:$0xf0]  ;;  %v1799_v5 = vld [vmem:[#allocation5 + $0x4] sm:$0xf]  ;;  %v1845_v7 = vld [vmem:[#allocation5 + $0x174] sm:$0xf]  ;;  %v1356_v12 = vor.u32 %v1817_v61, %v1353_v0 }
  0x48   :  { %841 = vmatpush.bf16.msra.mxu2 %v1396_v6  ;;  %v1281_v6 = vld [vmem:[#allocation5 + $0x8] sm:$0xf0]  ;;  %v1465_v9 = vld [vmem:[#allocation5 + $0x178] sm:$0xf0]  ;;  %v1599_v13 = vld [vmem:[#allocation5 + $0x280] sm:$0xf]  ;;  %v1536_v16 = vor.u32 %v1864_v2, %v1535_v1 }
  0x49   :  { %829 = vmatpush.bf16.msrb.mxu3 %v1324_v10  ;;  %v1877_v10 = vld [vmem:[#allocation5 + $0x274] sm:$0xf]  ;;  %v1593_v11 = vld [vmem:[#allocation5 + $0x278] sm:$0xf0]  ;;  %v1880_v14 = vld [vmem:[#allocation5 + $0x284] sm:$0xf0] }
  0x4a   :  { %803 = vmatpush.bf16.msrb.mxu1 %v1640_v17  ;;  %v128_v15 = vld [vmem:[#allocation2 + $0x20] sm:$0xff]  ;;  %v1284_v17 = vor.u32 %v1799_v5, %v1281_v6  ;;  %v1861_v20 = vld [vmem:[#allocation5 + $0x1f4] sm:$0xf]  ;;  %v1529_v23 = vld [vmem:[#allocation5 + $0x1f8] sm:$0xf0]  ;;  %v1600_v26 = vor.u32 %v1880_v14, %v1599_v13 }
  0x4b   :  { %791 = vmatpush.bf16.msrb.mxu0 %v1568_v21  ;;  %v1345_v19 = vld [vmem:[#allocation5 + $0x88] sm:$0xf0]  ;;  %v1468_v21 = vor.u32 %v1845_v7, %v1465_v9  ;;  %v1893_v24 = vld [vmem:[#allocation5 + $0x2f4] sm:$0xf]  ;;  %v1657_v25 = vld [vmem:[#allocation5 + $0x2f8] sm:$0xf0] }
  0x4c   :  { %842 = vmatpush.bf16.msra.mxu2 %v1388_v18  ;;  %v1815_v18 = vld [vmem:[#allocation5 + $0x84] sm:$0xf]  ;;  %v129_v27 = vld [vmem:[#allocation2 + $0x28] sm:$0xff]  ;;  %v1585_v33 = vld [vmem:[#allocation5 + $0x268] sm:$0xf0] }
  0x4d   :  { %830 = vmatpush.bf16.msrb.mxu3 %v1316_v22  ;;  %v1596_v22 = vor.u32 %v1877_v10, %v1593_v11  ;;  %v1843_v28 = vld [vmem:[#allocation5 + $0x164] sm:$0xf]  ;;  %v1348_v31 = vor.u32 %v1815_v18, %v1345_v19  ;;  %v2222_v37 = vpack.c.bf16 %v129_v27, %v129_v27  ;;  %v1521_v39 = vld [vmem:[#allocation5 + $0x1e8] sm:$0xf0]  ;;  %v1449_v45 = vld [vmem:[#allocation5 + $0x158] sm:$0xf0] }
  0x4e   :  { %804 = vmatpush.bf16.msrb.mxu1 %v1632_v29  ;;  %v1457_v29 = vld [vmem:[#allocation5 + $0x168] sm:$0xf0]  ;;  %v1875_v32 = vld [vmem:[#allocation5 + $0x264] sm:$0xf]  ;;  %v1873_v46 = vld [vmem:[#allocation5 + $0x254] sm:$0xf] }
  0x4f   :  { %792 = vmatpush.bf16.msrb.mxu0 %v1560_v34  ;;  %1669 = vmatmul.msk.bf16.vlgmr.msrb.gmra.mxu2 %vm732_vm0, %v2216_v43  ;;  %v1532_v34 = vor.u32 %v1861_v20, %v1529_v23  ;;  %v1859_v36 = vld [vmem:[#allocation5 + $0x1e4] sm:$0xf]  ;;  %v1460_v38 = vor.u32 %v1843_v28, %v1457_v29  ;;  %v1649_v41 = vld [vmem:[#allocation5 + $0x2e8] sm:$0xf0]  ;;  %v1857_v50 = vld [vmem:[#allocation5 + $0x1d4] sm:$0xf] }
  0x50   :  { %843 = vmatpush.bf16.msra.mxu2 %v1380_v30  ;;  %v2220_v30 = vpack.c.bf16 %v128_v15, %v128_v15  ;;  %v1891_v40 = vld [vmem:[#allocation5 + $0x2e4] sm:$0xf]  ;;  %v1513_v52 = vld [vmem:[#allocation5 + $0x1d8] sm:$0xf0]  ;;  %v1889_v54 = vld [vmem:[#allocation5 + $0x2d4] sm:$0xf] }
  0x51   :  { %831 = vmatpush.bf16.msrb.mxu3 %v1308_v35  ;;  %v1660_v35 = vor.u32 %v1893_v24, %v1657_v25  ;;  %v1652_v49 = vor.u32 %v1891_v40, %v1649_v41  ;;  %v1641_v55 = vld [vmem:[#allocation5 + $0x2d8] sm:$0xf0]  ;;  %v1441_v59 = vld [vmem:[#allocation5 + $0x148] sm:$0xf0]  ;;  %v1871_v60 = vld [vmem:[#allocation5 + $0x244] sm:$0xf] }
  0x52   :  { %805 = vmatpush.bf16.msrb.mxu1 %v1624_v42  ;;  %v1588_v42 = vor.u32 %v1875_v32, %v1585_v33  ;;  %v1569_v61 = vld [vmem:[#allocation5 + $0x248] sm:$0xf0]  ;;  %v1855_v0 = vld [vmem:[#allocation5 + $0x1c4] sm:$0xf]  ;;  %v1433_v9 = vld [vmem:[#allocation5 + $0x138] sm:$0xf0] }
  0x53   :  { %793 = vmatpush.bf16.msrb.mxu0 %v1552_v47  ;;  %v1577_v47 = vld [vmem:[#allocation5 + $0x258] sm:$0xf0]  ;;  %v1505_v2 = vld [vmem:[#allocation5 + $0x1c8] sm:$0xf0]  ;;  %v1887_v5 = vld [vmem:[#allocation5 + $0x2c4] sm:$0xf]  ;;  %v1572_v7 = vor.u32 %v1871_v60, %v1569_v61 }
  0x54   :  { %844 = vmatpush.bf16.msra.mxu2 %v1372_v44  ;;  %v1841_v44 = vld [vmem:[#allocation5 + $0x154] sm:$0xf]  ;;  %v1633_v6 = vld [vmem:[#allocation5 + $0x2c8] sm:$0xf0]  ;;  %v1561_v11 = vld [vmem:[#allocation5 + $0x238] sm:$0xf0] }
  0x55   :  { %832 = vmatpush.bf16.msrb.mxu3 %v1300_v48  ;;  %v1524_v48 = vor.u32 %v1859_v36, %v1521_v39  ;;  %v1452_v53 = vor.u32 %v1841_v44, %v1449_v45  ;;  %v1869_v10 = vld [vmem:[#allocation5 + $0x234] sm:$0xf]  ;;  %v1497_v14 = vld [vmem:[#allocation5 + $0x1b8] sm:$0xf0]  ;;  %v1835_v18 = vld [vmem:[#allocation5 + $0x124] sm:$0xf] }
  0x56   :  { %806 = vmatpush.bf16.msrb.mxu1 %v1616_v56  ;;  %v1839_v56 = vld [vmem:[#allocation5 + $0x144] sm:$0xf]  ;;  %v1885_v15 = vld [vmem:[#allocation5 + $0x2b4] sm:$0xf]  ;;  %v1425_v19 = vld [vmem:[#allocation5 + $0x128] sm:$0xf0] }
  0x57   :  { %794 = vmatpush.bf16.msrb.mxu0 %v1544_v62  ;;  %v1516_v62 = vor.u32 %v1857_v50, %v1513_v52  ;;  %v1444_v1 = vor.u32 %v1839_v56, %v1441_v59  ;;  %v1867_v20 = vld [vmem:[#allocation5 + $0x224] sm:$0xf]  ;;  %v1428_v25 = vor.u32 %v1835_v18, %v1425_v19  ;;  %v1617_v28 = vld [vmem:[#allocation5 + $0x2a8] sm:$0xf0]  ;;  %v1417_v32 = vld [vmem:[#allocation5 + $0x118] sm:$0xf0] }
  0x58   :  { %845 = vmatpush.bf16.msra.mxu2 %v1364_v57  ;;  %v1580_v57 = vor.u32 %v1873_v46, %v1577_v47  ;;  %v1851_v24 = vld [vmem:[#allocation5 + $0x1a4] sm:$0xf]  ;;  %v1865_v33 = vld [vmem:[#allocation5 + $0x214] sm:$0xf]  ;;  %v1481_v40 = vld [vmem:[#allocation5 + $0x198] sm:$0xf0] }
  0x59   :  { %833 = vmatpush.bf16.msrb.mxu3 %v1292_v63  ;;  %v1644_v63 = vor.u32 %v1889_v54, %v1641_v55  ;;  %v1883_v27 = vld [vmem:[#allocation5 + $0x2a4] sm:$0xf]  ;;  %v1881_v41 = vld [vmem:[#allocation5 + $0x294] sm:$0xf]  ;;  %v1409_v46 = vld [vmem:[#allocation5 + $0x108] sm:$0xf0] }
  0x5a   :  { %807 = vmatpush.bf16.msrb.mxu1 %v1608_v8  ;;  %v1837_v8 = vld [vmem:[#allocation5 + $0x134] sm:$0xf]  ;;  %v1620_v36 = vor.u32 %v1883_v27, %v1617_v28  ;;  %v1831_v45 = vld [vmem:[#allocation5 + $0x104] sm:$0xf]  ;;  %v1665_v50 = vld [vmem:[#allocation5 + $0x308] sm:$0xf0] }
  0x5b   :  { %795 = vmatpush.bf16.msrb.mxu0 %v1536_v16  ;;  %v1436_v13 = vor.u32 %v1837_v8, %v1433_v9  ;;  %v1625_v16 = vld [vmem:[#allocation5 + $0x2b8] sm:$0xf0]  ;;  %v1863_v47 = vld [vmem:[#allocation5 + $0x204] sm:$0xf]  ;;  %v1412_v54 = vor.u32 %v1831_v45, %v1409_v46  ;;  %v1473_v56 = vld [vmem:[#allocation5 + $0x188] sm:$0xf0] }
  0x5c   :  { %846 = vmatpush.bf16.msra.mxu2 %v1356_v12  ;;  %v1853_v12 = vld [vmem:[#allocation5 + $0x1b4] sm:$0xf]  ;;  %v1628_v23 = vor.u32 %v1885_v15, %v1625_v16  ;;  %v1847_v55 = vld [vmem:[#allocation5 + $0x184] sm:$0xf]  ;;  %v1601_v60 = vld [vmem:[#allocation5 + $0x288] sm:$0xf0] }
  0x5d   :  { %834 = vmatpush.bf16.msrb.mxu3 %v1284_v17  ;;  %v1564_v17 = vor.u32 %v1869_v10, %v1561_v11  ;;  %v1879_v59 = vld [vmem:[#allocation5 + $0x284] sm:$0xf]  ;;  %v1912_v11 = vld [vmem:[#allocation8 + $0x78] sm:$0xff]  ;;  %v1910_v19 = vld [vmem:[#allocation8 + $0x68] sm:$0xff] }
  0x5e   :  { %808 = vmatpush.bf16.msrb.mxu1 %v1600_v26  ;;  %796 = vmatmul.bf16.vlgmr.msrb.gmra.mxu0 %v2220_v30  ;;  %v1489_v26 = vld [vmem:[#allocation5 + $0x1a8] sm:$0xf0] }
  0x5f   :  { %853 = vmatpush.bf16.msra.mxu0 %v1468_v21  ;;  %v1553_v21 = vld [vmem:[#allocation5 + $0x228] sm:$0xf0] }
  0x60   :  { %847 = vmatpush.bf16.msra.mxu2 %v1348_v31  ;;  %835 = vmatmul.bf16.vlgmr.msrb.gmra.mxu3 %v2206_v58  ;;  %v1636_v58 = vor.u32 %v1887_v5, %v1633_v6  ;;  %v1556_v29 = vor.u32 %v1867_v20, %v1553_v21  ;;  %v1833_v31 = vld [vmem:[#allocation5 + $0x114] sm:$0xf]  ;;  %v1900_v6 = vld [vmem:[#allocation8 + $0x18] sm:$0xff] }
  0x61   :  { %879 = vmatpush.bf16.msra.mxu3 %v1596_v22  ;;  %809 = vmatmul.bf16.vlgmr.msrb.gmra.mxu1 %v2222_v37  ;;  %v1500_v22 = vor.u32 %v1853_v12, %v1497_v14  ;;  %v1420_v39 = vor.u32 %v1833_v31, %v1417_v32  ;;  %v1901_v5 = vld [vmem:[#allocation8 + $0x20] sm:$0xff]  ;;  %v1908_v27 = vld [vmem:[#allocation8 + $0x58] sm:$0xff]  ;;  %v1907_v32 = vld [vmem:[#allocation8 + $0x50] sm:$0xff] }
  0x62   :  { %866 = vmatpush.bf16.msra.mxu1 %v1532_v34  ;;  %v1545_v34 = vld [vmem:[#allocation5 + $0x218] sm:$0xf0] }
  0x63   :  { %854 = vmatpush.bf16.msra.mxu0 %v1460_v38  ;;  %848 = vmatmul.bf16.vlgmr.msra.gmra.mxu2 %v2210_v4  ;;  %v1508_v4 = vor.u32 %v1855_v0, %v1505_v2  ;;  %v1849_v38 = vld [vmem:[#allocation5 + $0x194] sm:$0xf]  ;;  %v1548_v44 = vor.u32 %v1865_v33, %v1545_v34  ;;  %v1904_v0 = vld [vmem:[#allocation8 + $0x38] sm:$0xff]  ;;  %v1902_v2 = vld [vmem:[#allocation8 + $0x28] sm:$0xff] }
  0x64   :  { %892 = vmatpush.bf16.msrb.mxu2 %v1660_v35  ;;  %v1492_v35 = vor.u32 %v1851_v24, %v1489_v26  ;;  %v1484_v52 = vor.u32 %v1849_v38, %v1481_v40  ;;  %v1906_v38 = vld [vmem:[#allocation8 + $0x48] sm:$0xff] }
  0x65   :  { %880 = vmatpush.bf16.msra.mxu3 %v1588_v42  ;;  %v1609_v42 = vld [vmem:[#allocation5 + $0x298] sm:$0xf0] }
  0x66   :  { %867 = vmatpush.bf16.msra.mxu1 %v1524_v48  ;;  %v1537_v48 = vld [vmem:[#allocation5 + $0x208] sm:$0xf0] }
  0x67   :  { %855 = vmatpush.bf16.msra.mxu0 %v1452_v53  ;;  %v1612_v53 = vor.u32 %v1881_v41, %v1609_v42 }
  0x68   :  { %893 = vmatpush.bf16.msrb.mxu2 %v1652_v49  ;;  %v1895_v49 = vld [vmem:[#allocation5 + $0x304] sm:$0xf] }
  0x69   :  { %881 = vmatpush.bf16.msra.mxu3 %v1580_v57  ;;  %v1540_v57 = vor.u32 %v1863_v47, %v1537_v48  ;;  %v1668_v61 = vor.u32 %v1895_v49, %v1665_v50 }
  0x6a   :  { %868 = vmatpush.bf16.msra.mxu1 %v1516_v62  ;;  %v1476_v62 = vor.u32 %v1847_v55, %v1473_v56 }
  0x6b   :  { %856 = vmatpush.bf16.msra.mxu0 %v1444_v1  ;;  %v1903_v1 = vld [vmem:[#allocation8 + $0x30] sm:$0xff] }
  0x6c   :  { %894 = vmatpush.bf16.msrb.mxu2 %v1644_v63  ;;  %v1604_v63 = vor.u32 %v1879_v59, %v1601_v60 }
  0x6d   :  { %882 = vmatpush.bf16.msra.mxu3 %v1572_v7 }
  0x6e   :  { %869 = vmatpush.bf16.msra.mxu1 %v1508_v4 }
  0x6f   :  { %857 = vmatpush.bf16.msra.mxu0 %v1436_v13  ;;  %v1911_v13 = vld [vmem:[#allocation8 + $0x70] sm:$0xff] }
  0x70   :  { %895 = vmatpush.bf16.msrb.mxu2 %v1636_v58 }
  0x71   :  { %883 = vmatpush.bf16.msra.mxu3 %v1564_v17 }
  0x72   :  { %870 = vmatpush.bf16.msra.mxu1 %v1500_v22  ;;  %v1909_v22 = vld [vmem:[#allocation8 + $0x60] sm:$0xff] }
  0x73   :  { %858 = vmatpush.bf16.msra.mxu0 %v1428_v25 }
  0x74   :  { %896 = vmatpush.bf16.msrb.mxu2 %v1628_v23 }
  0x75   :  { %884 = vmatpush.bf16.msra.mxu3 %v1556_v29 }
  0x76   :  { %871 = vmatpush.bf16.msra.mxu1 %v1492_v35 }
  0x77   :  { %859 = vmatpush.bf16.msra.mxu0 %v1420_v39  ;;  %v1905_v39 = vld [vmem:[#allocation8 + $0x40] sm:$0xff] }
  0x78   :  { %897 = vmatpush.bf16.msrb.mxu2 %v1620_v36 }
  0x79   :  { %885 = vmatpush.bf16.msra.mxu3 %v1548_v44 }
  0x7a   :  { %872 = vmatpush.bf16.msra.mxu1 %v1484_v52 }
  0x7b   :  { %860 = vmatpush.bf16.msra.mxu0 %v1412_v54 }
  0x7c   :  { %898 = vmatpush.bf16.msrb.mxu2 %v1612_v53 }
  0x7d   :  { %886 = vmatpush.bf16.msra.mxu3 %v1540_v57 }
  0x7e   :  { %873 = vmatpush.bf16.msra.mxu1 %v1476_v62  ;;  %861 = vmatmul.bf16.vlgmr.msra.gmra.mxu0 %v2204_v51  ;;  %v1899_v51 = vld [vmem:[#allocation8 + $0x10] sm:$0xff] }
  0x7f   :  { %912 = vmatpush.bf16.msrb.mxu0 %v1668_v61 }
  0x80   :  { %887 = vmatmul.bf16.vlgmr.msra.gmra.mxu3 %v2220_v30  ;;  %899 = vmatpush.bf16.msrb.mxu2 %v1604_v63  ;;  %v1898_v30 = vld [vmem:[#allocation8 + $0x8] sm:$0xff] }
  0x81   :  { %874 = vmatmul.bf16.vlgmr.msra.gmra.mxu1 %v2208_v3  ;;  %1067 = vmatpush.bf16.msrb.mxu3 %v1912_v11  ;;  %v1925_v11 = vld [vmem:[#allocation11 + $0x20] sm:$0xff] }
  0x82   :  { %1054 = vmatpush.bf16.msrb.mxu1 %v1904_v0 }
  0x83   :  { %900 = vmatmul.bf16.vlgmr.msrb.gmra.mxu2 %v2222_v37  ;;  %v1897_v37 = vld [vmem:[#allocation8] sm:$0xff] }
  0x85   :  { %1068 = vmatpush.bf16.msrb.mxu3 %v1911_v13 }
  0x86   :  { %1055 = vmatpush.bf16.msrb.mxu1 %v1903_v1  ;;  %v1920_v1 = vld [vmem:[#allocation10 + $0x38] sm:$0xff] }
  0x87   :  { %1150 = vmatpush.bf16.msra.mxu0 %v1920_v1 }
  0x89   :  { %1069 = vmatpush.bf16.msrb.mxu3 %v1910_v19  ;;  %v1922_v19 = vld [vmem:[#allocation11 + $0x8] sm:$0xff] }
  0x8a   :  { %1056 = vmatpush.bf16.msrb.mxu1 %v1902_v2  ;;  %v1919_v2 = vld [vmem:[#allocation10 + $0x30] sm:$0xff] }
  0x8b   :  { %1151 = vmatpush.bf16.msra.mxu0 %v1919_v2 }
  0x8d   :  { %1070 = vmatpush.bf16.msrb.mxu3 %v1909_v22 }
  0x8e   :  { %1670 = vmatmul.msk.bf16.vlgmr.msrb.gmra.mxu0 %vm732_vm0, %v2216_v43  ;;  %1057 = vmatpush.bf16.msrb.mxu1 %v1901_v5  ;;  %v236_v43 = vld [vmem:[#allocation7] sm:$0x3]  ;;  %v1918_v5 = vld [vmem:[#allocation10 + $0x28] sm:$0xff] }
  0x8f   :  { %v238_v58 = vperm.slane %v236_v43, 0  ;;  %v239_v42 = vperm.slane %v236_v43, 1  ;;  %1152 = vmatpush.bf16.msra.mxu0 %v1918_v5  ;;  %v1928_v43 = vld [vmem:[#allocation11 + $0x38] sm:$0xff] }
  0x90   :  { %1233 = vmatpush.bf16.msra.mxu2 %v1928_v43 }
  0x91   :  { %1071 = vmatpush.bf16.msrb.mxu3 %v1908_v27  ;;  %v1942_v27 = vld [vmem:[%s2254_s8] ss:$0 sm:$0xff] }
  0x92   :  { %1058 = vmatpush.bf16.msrb.mxu1 %v1900_v6  ;;  %v1917_v6 = vld [vmem:[#allocation10 + $0x20] sm:$0xff] }
  0x93   :  { %1153 = vmatpush.bf16.msra.mxu0 %v1917_v6 }
  0x95   :  { %1072 = vmatpush.bf16.msrb.mxu3 %v1907_v32 }
  0x96   :  { %1059 = vmatpush.bf16.msrb.mxu1 %v1899_v51  ;;  %v1916_v51 = vld [vmem:[#allocation10 + $0x18] sm:$0xff] }
  0x97   :  { %1154 = vmatpush.bf16.msra.mxu0 %v1916_v51 }
  0x99   :  { %1073 = vmatpush.bf16.msrb.mxu3 %v1906_v38 }
  0x9a   :  { %1060 = vmatpush.bf16.msrb.mxu1 %v1898_v30  ;;  %v1915_v30 = vld [vmem:[#allocation10 + $0x10] sm:$0xff] }
  0x9b   :  { %1155 = vmatpush.bf16.msra.mxu0 %v1915_v30 }
  0x9d   :  { %1074 = vmatpush.bf16.msrb.mxu3 %v1905_v39 }
  0x9e   :  { %1061 = vmatpush.bf16.msrb.mxu1 %v1897_v37  ;;  %v1914_v37 = vld [vmem:[#allocation10 + $0x8] sm:$0xff] }
  0x9f   :  { %1156 = vmatpush.bf16.msra.mxu0 %v1914_v37 }
  0xbb   :  { %v745_v7 = vpop.f32.mrf.mxu0 }
  0xbc   :  { %v746_v14 = vadd.f32 %v745_v7, %v238_v58  ;;  %v1923_v58 = vld [vmem:[#allocation11 + $0x10] sm:$0xff] }
  0xbe   :  { %v758_v3 = vpop.f32.mrf.mxu1 }
  0xbf   :  { %v759_v16 = vadd.f32 %v758_v3, %v746_v14 }
  0xc2   :  { %v771_v8 = vpop.f32.mrf.mxu2 }
  0xc3   :  { %v784_v9 = vpop.f32.mrf.mxu3  ;;  %v747_v10 = vpop.f32.mrf.mxu0  ;;  %v772_v18 = vadd.f32 %v771_v8, %v759_v16  ;;  %v1913_v8 = vld [vmem:[#allocation10] sm:$0xff] }
  0xc4   :  { %1157 = vmatpush.bf16.msra.mxu0 %v1913_v8  ;;  %v1926_v10 = vld [vmem:[#allocation11 + $0x28] sm:$0xff] }
  0xc5   :  { %v785_v20 = vadd.f32 %v784_v9, %v772_v18  ;;  %v1927_v9 = vld [vmem:[#allocation11 + $0x30] sm:$0xff] }
  0xc6   :  { %v760_v4 = vpop.f32.mrf.mxu1  ;;  %1234 = vmatpush.bf16.msra.mxu2 %v1927_v9 }
  0xc7   :  { %v1924_v4 = vld [vmem:[#allocation11 + $0x18] sm:$0xff] }
  0xca   :  { %v773_v12 = vpop.f32.mrf.mxu2  ;;  %1235 = vmatpush.bf16.msra.mxu2 %v1926_v10 }
  0xcb   :  { %v786_v15 = vpop.f32.mrf.mxu3  ;;  %v1940_v12 = vld [vmem:[%s2250_s4] ss:$0 sm:$0xff] }
  0xce   :  { %1236 = vmatpush.bf16.msra.mxu2 %v1925_v11 }
  0xd2   :  { %v823_v17 = vpop.f32.mrf.mxu2  ;;  %1237 = vmatpush.bf16.msra.mxu2 %v1924_v4 }
  0xd6   :  { %1238 = vmatpush.bf16.msra.mxu2 %v1923_v58 }
  0xda   :  { %v825_v24 = vpop.f32.mrf.mxu2  ;;  %1239 = vmatpush.bf16.msra.mxu2 %v1922_v19 }
  0xdb   :  { %v797_v21 = vpop.f32.mrf.mxu0 }
  0xdc   :  { %v798_v23 = vadd.f32 %v797_v21, %v785_v20  ;;  %v1921_v20 = vld [vmem:[#allocation11] sm:$0xff]  ;;  %v1941_v21 = vld [vmem:[%s2252_s6] ss:$0 sm:$0xff]  ;;  %s2135_s6 = smov [#allocation13]  }
  0xdd   :  { %s1262_s21 = sshll.u32 %s2135_s6, 4  ;;  %s1263_s21 = int_to_ptr.vmem [resolvable:$true] %s1262_s21 }
  0xde   :  { %v810_v25 = vpop.f32.mrf.mxu1  ;;  %1240 = vmatpush.bf16.msra.mxu2 %v1921_v20 }
  0xdf   :  { %v811_v26 = vadd.f32 %v810_v25, %v798_v23 }
  0xe1   :  { %v824_v28 = vadd.f32 %v823_v17, %v811_v26 }
  0xe3   :  { %v918_v29 = vmax.f32 %v824_v28, 0.0  ;;  %v799_v31 = vpop.f32.mrf.mxu0  ;;  %v836_v35 = vpop.f32.mrf.mxu3 }
  0xe4   :  { %v837_v44 = vadd.f32 %v836_v35, %v239_v42 }
  0xe5   :  { %v920_v33 = vpack.c.bf16 %v918_v29, %v918_v29 }
  0xe6   :  { %v849_v34 = vpop.f32.mrf.mxu2  ;;  %v812_v36 = vpop.f32.mrf.mxu1 }
  0xe7   :  { %1062 = vmatmul.bf16.vlgmr.msrb.gmra.mxu1 %v920_v33  ;;  %v850_v46 = vadd.f32 %v849_v34, %v837_v44 }
  0xeb   :  { %v838_v41 = vpop.f32.mrf.mxu3 }
  0xee   :  { %v851_v40 = vpop.f32.mrf.mxu2 }
  0xfb   :  { %v862_v45 = vpop.f32.mrf.mxu0 }
  0xfc   :  { %v863_v48 = vadd.f32 %v862_v45, %v850_v46 }
  0xfe   :  { %v875_v47 = vpop.f32.mrf.mxu1 }
  0xff   :  { %v876_v52 = vadd.f32 %v875_v47, %v863_v48 }
 0x103   :  { %v888_v49 = vpop.f32.mrf.mxu3  ;;  %v864_v50 = vpop.f32.mrf.mxu0 }
 0x104   :  { %v889_v54 = vadd.f32 %v888_v49, %v876_v52 }
 0x106   :  { %v901_v53 = vpop.f32.mrf.mxu2  ;;  %v877_v55 = vpop.f32.mrf.mxu1 }
 0x107   :  { %v902_v56 = vadd.f32 %v901_v53, %v889_v54 }
 0x10b   :  { %v890_v57 = vpop.f32.mrf.mxu3  ;;  %v914_v59 = vpop.f32.mrf.mxu0 }
 0x10c   :  { %v915_v60 = vadd.f32 %v914_v59, %v902_v56 }
 0x10e   :  { %v903_v61 = vpop.f32.mrf.mxu2  ;;  %v919_v62 = vmax.f32 %v915_v60, 0.0 }
 0x110   :  { %v921_v63 = vpack.c.bf16 %v919_v62, %v919_v62 }
 0x112   :  { %1075 = vmatmul.bf16.vlgmr.msrb.gmra.mxu3 %v921_v63 }
 0x113   :  { %v916_v0 = vpop.f32.mrf.mxu0 }
 0x164   :  { %v1063_v7 = vpop.f32.mrf.mxu1 }
 0x165   :  { %v1064_v13 = vadd.f32 %v1940_v12, %v1063_v7 }
 0x16c   :  { %v1065_v3 = vpop.f32.mrf.mxu1 }
 0x195   :  { %v1076_v14 = vpop.f32.mrf.mxu3 }
 0x196   :  { %v1077_v15 = vadd.f32 %v1076_v14, %v1064_v13 }
 0x198   :  { %v1080_v16 = vmax.f32 %v1077_v15, 0.0 }
 0x19a   :  { %v1081_v17 = vpack.c.bf16 %v1080_v16, %v1080_v16 }
 0x19c   :  { %1158 = vmatmul.bf16.vlgmr.msra.gmra.mxu0 %v1081_v17 }
 0x19d   :  { %v1078_v18 = vpop.f32.mrf.mxu3 }
 0x219   :  { %v1159_v22 = vpop.f32.mrf.mxu0 }
 0x21a   :  { %v1160_v23 = vadd.f32 %v1941_v21, %v1159_v22 }
 0x21c   :  { %v1163_v24 = vmax.f32 %v1160_v23, 0.0 }
 0x21e   :  { %v1164_v25 = vpack.c.bf16 %v1163_v24, %v1163_v24 }
 0x220   :  { %1241 = vmatmul.bf16.vlgmr.msra.gmra.mxu2 %v1164_v25 }
 0x221   :  { %v1161_v26 = vpop.f32.mrf.mxu0 }
 0x2a3   :  { %v1242_v28 = vpop.f32.mrf.mxu2 }
 0x2a4   :  { %v1243_v29 = vadd.f32 %v1942_v27, %v1242_v28 }
 0x2a6   :  { %1246 = vmax.xlane.f32.xlu0 %v1243_v29 }
 0x2ab   :  { %v1244_v31 = vpop.f32.mrf.mxu2 }
 0x319   :  { %v1247_v32 = vpop.xlane.xlu0 %1246 }
 0x31a   :  { %v1248_v33 = vsub.f32 %v1243_v29, %v1247_v32 }
 0x31c   :  { %v1249_v34 = vmul.f32 1.442695, %v1248_v33 }
 0x31e   :  { %1943 = vpow2.f32 %v1249_v34 }
 0x324   :  { %v1944_v35 = vpop.eup %1943 }
 0x325   :  { %1251 = vadd.xlane.f32.xlu0 %v1944_v35 }
 0x398   :  { %v1252_v36 = vpop.xlane.xlu0 %1251 }
 0x399   :  { %1945 = vlog2.f32 %v1252_v36 }
 0x39f   :  { %v1946_v38 = vpop.eup %1945 }
 0x3a0   :  { %v1254_v39 = vmul.f32 0.6931472, %v1946_v38 }
 0x3a2   :  { %v1255_v40 = vsub.f32 %v1248_v33, %v1254_v39 }
 0x3a4   :  { %1256 = vst [vmem:[#allocation13] sm:$0xff] %v1255_v40 }
 0x3a5   :  { %1267 = dma.vmem_to_hbm [thread:$0]  %s1263_s21, 128, %s1265_s23, [#allocation4]  }
 0x3a6   :  { %2123 = dma.done.wait [#allocation4], 128  }
 0x3a7   :  { %2124 = vsyncadd [#allocation4], 4294967168 }
 0x3a8   :  { %1272 = vsyncpa [#allocation3], 1 }
 0x3a9   :  { %1273 = vsyncpa [#allocation6], 1 }
 0x3aa   :  { %1274 = vsyncpa [#allocation9], 1 }
 0x3ab   :  { %1275 = vsyncpa [#allocation12], 1 }
 0x3ac   :  { %1276 = vsyncpa [#allocation4], 1 }

</bundles_post_ra>
